<compile_context>
chip_gen: v5e
topology: v5e:2x2
jax: 0.10.0
libtpu: 0.0.40
codegen_flags: <defaults>
</compile_context>

<pallas_src>
import jax
import jax.numpy as jnp
from jax import lax
from jax.experimental import pallas as pl
from jax.experimental.pallas import tpu as pltpu

LANES = 128            # vreg lane width
DEFAULT_TILE_ROWS = 512  # 512*128 = 65536 batch elems / grid step (~3.4 MB moved)


def _hamilt_kernel(m_ref, p_ref, q_ref, o_ref):
    # m_ref: SMEM (3,) masses
    # p_ref, q_ref: VMEM (6, tile_rows, 128)
    # o_ref: VMEM (tile_rows, 128)
    m0 = m_ref[0]
    m1 = m_ref[1]
    m2 = m_ref[2]
    # Hoist scalar products out of the vector math (scalar slots, once/tile).
    m01 = m0 * m1
    m02 = m0 * m2
    m12 = m1 * m2
    hm0 = 0.5 * m0
    hm1 = 0.5 * m1
    hm2 = 0.5 * m2

    # Dense (tile_rows, 128) component slabs.
    q1x, q1y = q_ref[0], q_ref[1]
    q2x, q2y = q_ref[2], q_ref[3]
    q3x, q3y = q_ref[4], q_ref[5]

    def pair_potential(ax, ay, bx, by, mab):
        dx = ax - bx
        dy = ay - by
        r2 = dx * dx + dy * dy
        # -(m_i*m_j) / sqrt(r2) via a single exact rsqrt (EUP slot).
        return (-mab) * lax.rsqrt(r2)

    potential = (
        pair_potential(q1x, q1y, q2x, q2y, m01)
        + pair_potential(q1x, q1y, q3x, q3y, m02)
        + pair_potential(q2x, q2y, q3x, q3y, m12)
    )

    p1x, p1y = p_ref[0], p_ref[1]
    p2x, p2y = p_ref[2], p_ref[3]
    p3x, p3y = p_ref[4], p_ref[5]

    kinetic = (
        hm0 * (p1x * p1x + p1y * p1y)
        + hm1 * (p2x * p2x + p2y * p2y)
        + hm2 * (p3x * p3x + p3y * p3y)
    )

    o_ref[...] = potential + kinetic


def three_body_hamilt(p_vec, q_vec, masses, *, tile_rows=DEFAULT_TILE_ROWS):
    """p_vec, q_vec: (B, 6) float32; masses: (3,) float32 -> (B,) float32."""
    B = p_vec.shape[0]
    # Pad only to a lane multiple (needed for the free reshape), not to a full
    # tile multiple; partial edge blocks are handled by the grid/cdiv below.
    B_pad = ((B + LANES - 1) // LANES) * LANES
    R = B_pad // LANES

    # Block second-to-last dim must be a multiple of 8 or equal the full dim R.
    if tile_rows >= R:
        tile_rows = R
    else:
        tile_rows = max(8, (tile_rows // 8) * 8)
    n_tiles = pl.cdiv(R, tile_rows)

    p = jnp.asarray(p_vec, jnp.float32)
    q = jnp.asarray(q_vec, jnp.float32)
    if B_pad != B:
        pad = ((0, B_pad - B), (0, 0))
        p = jnp.pad(p, pad)
        q = jnp.pad(q, pad)

    # AoS (B, 6) -> SoA (6, R, 128): one fused pad+transpose copy in XLA; the
    # reshape after the transpose is free (row-major compatible).
    # TODO(synk): this is the one remaining extra HBM pass; it disappears if the
    # caller keeps phase-space data in (6, B) SoA layout upstream (or by fusing
    # the transpose into the input DMA via CompilerParams(allow_input_fusion)).
    p_t = p.T.reshape(6, R, LANES)
    q_t = q.T.reshape(6, R, LANES)
    masses = jnp.asarray(masses, jnp.float32)

    out = pl.pallas_call(
        _hamilt_kernel,
        out_shape=jax.ShapeDtypeStruct((R, LANES), jnp.float32),
        grid=(n_tiles,),
        in_specs=[
            pl.BlockSpec(memory_space=pltpu.MemorySpace.SMEM),         # masses
            pl.BlockSpec((6, tile_rows, LANES), lambda i: (0, i, 0)),  # p
            pl.BlockSpec((6, tile_rows, LANES), lambda i: (0, i, 0)),  # q
        ],
        out_specs=pl.BlockSpec((tile_rows, LANES), lambda i: (i, 0)),
        compiler_params=pltpu.CompilerParams(
            dimension_semantics=("parallel",)),
    )(masses, p_t, q_t)

    return out.reshape(B_pad)[:B]


def _reference(p_vec, q_vec, masses):
    """Pure-JAX reference mirroring the PyTorch module exactly."""
    q1, q2, q3 = q_vec[:, :2], q_vec[:, 2:4], q_vec[:, 4:]
    p1, p2, p3 = p_vec[:, :2], p_vec[:, 2:4], p_vec[:, 4:]
    q_lst = [q1, q2, q3]
    pot = jnp.zeros(q_vec.shape[0], jnp.float32)
    for i in range(3):
        for j in range(i + 1, 3):
            r_ij = jnp.sqrt(((q_lst[i] - q_lst[j]) ** 2).sum(1))
            pot = pot + (-masses[i] * masses[j] / r_ij)
    kin = 0.5 * (
        masses[0] * (p1 ** 2).sum(1)
        + masses[1] * (p2 ** 2).sum(1)
        + masses[2] * (p3 ** 2).sum(1)
    )
    return pot + kin


if __name__ == "__main__":
    # The module's only "parameter" is `masses` (G = 1).
    masses = jnp.array([1.0, 2.0, 3.0], dtype=jnp.float32)

    k0, k1, k2, k3 = jax.random.split(jax.random.PRNGKey(0), 4)

    # Small canonical check.
    B = 8
    p_vec = jax.random.normal(k0, (B, 6), dtype=jnp.float32)
    q_vec = jax.random.normal(k1, (B, 6), dtype=jnp.float32)
    out = jax.block_until_ready(three_body_hamilt(p_vec, q_vec, masses))
    ref = _reference(p_vec, q_vec, masses)
    assert out.shape == (B,)
    assert jnp.allclose(out, ref, rtol=1e-5, atol=1e-5), (out, ref)

    # Non-multiple-of-128 batch exercising lane padding and a partial edge
    # block (tile_rows < R so the last grid step is ragged and masked).
    B2 = 1300
    p2 = jax.random.normal(k2, (B2, 6), dtype=jnp.float32)
    q2 = jax.random.normal(k3, (B2, 6), dtype=jnp.float32)
    out2 = jax.block_until_ready(
        three_body_hamilt(p2, q2, masses, tile_rows=8))
    ref2 = _reference(p2, q2, masses)
    assert out2.shape == (B2,)
    assert jnp.allclose(out2, ref2, rtol=1e-5, atol=1e-5)

    print("KERNEL_OK")
</pallas_src>

<mosaic_0001>
module attributes {stable_mosaic.version = 11 : i64} {
  func.func @_hamilt_kernel(%arg0: i32, %arg1: memref<3xf32, #tpu.memory_space<smem>>, %arg2: memref<6x1x128xf32, #tpu.memory_space<vmem>>, %arg3: memref<6x1x128xf32, #tpu.memory_space<vmem>>, %arg4: memref<1x128xf32, #tpu.memory_space<vmem>>) attributes {dimension_semantics = [#tpu.dimension_semantics<parallel>], iteration_bounds = array<i64: 1>, scalar_prefetch = 0 : i64, scratch_operands = 0 : i64, tpu.core_type = #tpu.core_type<tc>, window_params = [{transform_indices = @transform_0, window_bounds = array<i64: 3>}, {transform_indices = @transform_1, window_bounds = array<i64: 6, 1, 128>}, {transform_indices = @transform_2, window_bounds = array<i64: 6, 1, 128>}, {transform_indices = @transform_3, window_bounds = array<i64: 1, 128>}]} {
    %c0 = arith.constant 0 : index
    %0 = memref.load %arg1[%c0] : memref<3xf32, #tpu.memory_space<smem>>
    %c1 = arith.constant 1 : index
    %1 = memref.load %arg1[%c1] : memref<3xf32, #tpu.memory_space<smem>>
    %c2 = arith.constant 2 : index
    %2 = memref.load %arg1[%c2] : memref<3xf32, #tpu.memory_space<smem>>
    %3 = arith.mulf %0, %1 : f32
    %4 = arith.mulf %0, %2 : f32
    %5 = arith.mulf %1, %2 : f32
    %cst = arith.constant 5.000000e-01 : f32
    %6 = arith.mulf %cst, %0 : f32
    %cst_0 = arith.constant 5.000000e-01 : f32
    %7 = arith.mulf %cst_0, %1 : f32
    %cst_1 = arith.constant 5.000000e-01 : f32
    %8 = arith.mulf %cst_1, %2 : f32
    %c0_2 = arith.constant 0 : index
    %c0_3 = arith.constant 0 : index
    %c0_4 = arith.constant 0 : index
    %9 = vector.load %arg3[%c0_2, %c0_3, %c0_4] : memref<6x1x128xf32, #tpu.memory_space<vmem>>, vector<1x1x128xf32>
    %10 = vector.shape_cast %9 : vector<1x1x128xf32> to vector<1x128xf32>
    %c1_5 = arith.constant 1 : index
    %c0_6 = arith.constant 0 : index
    %c0_7 = arith.constant 0 : index
    %11 = vector.load %arg3[%c1_5, %c0_6, %c0_7] : memref<6x1x128xf32, #tpu.memory_space<vmem>>, vector<1x1x128xf32>
    %12 = vector.shape_cast %11 : vector<1x1x128xf32> to vector<1x128xf32>
    %c2_8 = arith.constant 2 : index
    %c0_9 = arith.constant 0 : index
    %c0_10 = arith.constant 0 : index
    %13 = vector.load %arg3[%c2_8, %c0_9, %c0_10] : memref<6x1x128xf32, #tpu.memory_space<vmem>>, vector<1x1x128xf32>
    %14 = vector.shape_cast %13 : vector<1x1x128xf32> to vector<1x128xf32>
    %c3 = arith.constant 3 : index
    %c0_11 = arith.constant 0 : index
    %c0_12 = arith.constant 0 : index
    %15 = vector.load %arg3[%c3, %c0_11, %c0_12] : memref<6x1x128xf32, #tpu.memory_space<vmem>>, vector<1x1x128xf32>
    %16 = vector.shape_cast %15 : vector<1x1x128xf32> to vector<1x128xf32>
    %c4 = arith.constant 4 : index
    %c0_13 = arith.constant 0 : index
    %c0_14 = arith.constant 0 : index
    %17 = vector.load %arg3[%c4, %c0_13, %c0_14] : memref<6x1x128xf32, #tpu.memory_space<vmem>>, vector<1x1x128xf32>
    %18 = vector.shape_cast %17 : vector<1x1x128xf32> to vector<1x128xf32>
    %c5 = arith.constant 5 : index
    %c0_15 = arith.constant 0 : index
    %c0_16 = arith.constant 0 : index
    %19 = vector.load %arg3[%c5, %c0_15, %c0_16] : memref<6x1x128xf32, #tpu.memory_space<vmem>>, vector<1x1x128xf32>
    %20 = vector.shape_cast %19 : vector<1x1x128xf32> to vector<1x128xf32>
    %21 = arith.subf %10, %14 : vector<1x128xf32>
    %22 = arith.subf %12, %16 : vector<1x128xf32>
    %23 = arith.mulf %21, %21 : vector<1x128xf32>
    %24 = arith.mulf %22, %22 : vector<1x128xf32>
    %25 = arith.addf %23, %24 : vector<1x128xf32>
    %cst_17 = arith.constant 0.000000e+00 : f32
    %26 = arith.subf %cst_17, %3 : f32
    %27 = math.rsqrt %25 : vector<1x128xf32>
    %28 = vector.broadcast %26 : f32 to vector<1x128xf32>
    %29 = arith.mulf %28, %27 : vector<1x128xf32>
    %30 = arith.subf %10, %18 : vector<1x128xf32>
    %31 = arith.subf %12, %20 : vector<1x128xf32>
    %32 = arith.mulf %30, %30 : vector<1x128xf32>
    %33 = arith.mulf %31, %31 : vector<1x128xf32>
    %34 = arith.addf %32, %33 : vector<1x128xf32>
    %cst_18 = arith.constant 0.000000e+00 : f32
    %35 = arith.subf %cst_18, %4 : f32
    %36 = math.rsqrt %34 : vector<1x128xf32>
    %37 = vector.broadcast %35 : f32 to vector<1x128xf32>
    %38 = arith.mulf %37, %36 : vector<1x128xf32>
    %39 = arith.addf %29, %38 : vector<1x128xf32>
    %40 = arith.subf %14, %18 : vector<1x128xf32>
    %41 = arith.subf %16, %20 : vector<1x128xf32>
    %42 = arith.mulf %40, %40 : vector<1x128xf32>
    %43 = arith.mulf %41, %41 : vector<1x128xf32>
    %44 = arith.addf %42, %43 : vector<1x128xf32>
    %cst_19 = arith.constant 0.000000e+00 : f32
    %45 = arith.subf %cst_19, %5 : f32
    %46 = math.rsqrt %44 : vector<1x128xf32>
    %47 = vector.broadcast %45 : f32 to vector<1x128xf32>
    %48 = arith.mulf %47, %46 : vector<1x128xf32>
    %49 = arith.addf %39, %48 : vector<1x128xf32>
    %c0_20 = arith.constant 0 : index
    %c0_21 = arith.constant 0 : index
    %c0_22 = arith.constant 0 : index
    %50 = vector.load %arg2[%c0_20, %c0_21, %c0_22] : memref<6x1x128xf32, #tpu.memory_space<vmem>>, vector<1x1x128xf32>
    %51 = vector.shape_cast %50 : vector<1x1x128xf32> to vector<1x128xf32>
    %c1_23 = arith.constant 1 : index
    %c0_24 = arith.constant 0 : index
    %c0_25 = arith.constant 0 : index
    %52 = vector.load %arg2[%c1_23, %c0_24, %c0_25] : memref<6x1x128xf32, #tpu.memory_space<vmem>>, vector<1x1x128xf32>
    %53 = vector.shape_cast %52 : vector<1x1x128xf32> to vector<1x128xf32>
    %c2_26 = arith.constant 2 : index
    %c0_27 = arith.constant 0 : index
    %c0_28 = arith.constant 0 : index
    %54 = vector.load %arg2[%c2_26, %c0_27, %c0_28] : memref<6x1x128xf32, #tpu.memory_space<vmem>>, vector<1x1x128xf32>
    %55 = vector.shape_cast %54 : vector<1x1x128xf32> to vector<1x128xf32>
    %c3_29 = arith.constant 3 : index
    %c0_30 = arith.constant 0 : index
    %c0_31 = arith.constant 0 : index
    %56 = vector.load %arg2[%c3_29, %c0_30, %c0_31] : memref<6x1x128xf32, #tpu.memory_space<vmem>>, vector<1x1x128xf32>
    %57 = vector.shape_cast %56 : vector<1x1x128xf32> to vector<1x128xf32>
    %c4_32 = arith.constant 4 : index
    %c0_33 = arith.constant 0 : index
    %c0_34 = arith.constant 0 : index
    %58 = vector.load %arg2[%c4_32, %c0_33, %c0_34] : memref<6x1x128xf32, #tpu.memory_space<vmem>>, vector<1x1x128xf32>
    %59 = vector.shape_cast %58 : vector<1x1x128xf32> to vector<1x128xf32>
    %c5_35 = arith.constant 5 : index
    %c0_36 = arith.constant 0 : index
    %c0_37 = arith.constant 0 : index
    %60 = vector.load %arg2[%c5_35, %c0_36, %c0_37] : memref<6x1x128xf32, #tpu.memory_space<vmem>>, vector<1x1x128xf32>
    %61 = vector.shape_cast %60 : vector<1x1x128xf32> to vector<1x128xf32>
    %62 = arith.mulf %51, %51 : vector<1x128xf32>
    %63 = arith.mulf %53, %53 : vector<1x128xf32>
    %64 = arith.addf %62, %63 : vector<1x128xf32>
    %65 = vector.broadcast %6 : f32 to vector<1x128xf32>
    %66 = arith.mulf %65, %64 : vector<1x128xf32>
    %67 = arith.mulf %55, %55 : vector<1x128xf32>
    %68 = arith.mulf %57, %57 : vector<1x128xf32>
    %69 = arith.addf %67, %68 : vector<1x128xf32>
    %70 = vector.broadcast %7 : f32 to vector<1x128xf32>
    %71 = arith.mulf %70, %69 : vector<1x128xf32>
    %72 = arith.addf %66, %71 : vector<1x128xf32>
    %73 = arith.mulf %59, %59 : vector<1x128xf32>
    %74 = arith.mulf %61, %61 : vector<1x128xf32>
    %75 = arith.addf %73, %74 : vector<1x128xf32>
    %76 = vector.broadcast %8 : f32 to vector<1x128xf32>
    %77 = arith.mulf %76, %75 : vector<1x128xf32>
    %78 = arith.addf %72, %77 : vector<1x128xf32>
    %79 = arith.addf %49, %78 : vector<1x128xf32>
    %c0_38 = arith.constant 0 : index
    %c0_39 = arith.constant 0 : index
    %80 = vector.load %arg4[%c0_38, %c0_39] : memref<1x128xf32, #tpu.memory_space<vmem>>, vector<1x128xf32>
    tpu.vector_store %arg4[%c0_38, %c0_39], %79 {strides = array<i32>} : memref<1x128xf32, #tpu.memory_space<vmem>>, vector<1x128xf32>,
    return
  }
  func.func @transform_0(%arg0: i32) -> i32 {
    %c0_i32 = arith.constant 0 : i32
    %c0_i32_0 = arith.constant 0 : i32
    return %c0_i32 : i32
  }
  func.func @transform_1(%arg0: i32) -> (i32, i32, i32) {
    %c0_i32 = arith.constant 0 : i32
    %c0_i32_0 = arith.constant 0 : i32
    %c0_i32_1 = arith.constant 0 : i32
    return %c0_i32, %arg0, %c0_i32_0 : i32, i32, i32
  }
  func.func @transform_2(%arg0: i32) -> (i32, i32, i32) {
    %c0_i32 = arith.constant 0 : i32
    %c0_i32_0 = arith.constant 0 : i32
    %c0_i32_1 = arith.constant 0 : i32
    return %c0_i32, %arg0, %c0_i32_0 : i32, i32, i32
  }
  func.func @transform_3(%arg0: i32) -> (i32, i32) {
    %c0_i32 = arith.constant 0 : i32
    %c0_i32_0 = arith.constant 0 : i32
    return %arg0, %c0_i32 : i32, i32
  }
}

</mosaic_0001>

<bundles_post_ra>
// kernel: tpu_custom_call.1
= control target key start
LH: loop header
LB: loop body
LE: loop exit
PB: predicated region body
PF: predicated region fallthrough
CT: control target
= control target key end

     0   :  { %8 = vsyncpa [#allocation5], 0  ;;  %s350_s0 = inlined_call_operand.hbm [shape: f32[3], index: 0, kind: input, shape index: {}]   ;;  %s351_s1 = inlined_call_operand.hbm [shape: f32[6,1,128], index: 1, kind: input, shape index: {}]   ;;  %s352_s2 = inlined_call_operand.hbm [shape: f32[6,1,128], index: 2, kind: input, shape index: {}]   ;;  %s353_s3 = inlined_call_operand.hbm [shape: f32[1,128], index: 3, kind: output, shape index: {}]  }
   0x1   :  { %9 = vsyncpa [#allocation3], 0 }
   0x2   :  { %10 = vsyncpa [#allocation8], 0 }
   0x3   :  { %11 = vsyncpa [#allocation4], 0  ;;  %s17_s14 = sshll.u32 %s350_s0, 4  ;;  %s25_s17 = sshll.u32 %s351_s1, 4  ;;  %s18_s14 = int_to_ptr.hbm [resolvable:$true] %s17_s14  ;;  %s26_s17 = int_to_ptr.hbm [resolvable:$true] %s25_s17 }
   0x4   :  { %s291_s18 = smov [#allocation2]   ;;  %s292_s19 = smov [#allocation6]  }
   0x5   :  { %20 = dma.hbm_to_smem %s18_s14, 16, %s291_s18, [#allocation5]  }
   0x6   :  { %s27_s20 = sshll.u32 %s292_s19, 4  ;;  %s293_s21 = smov 16   ;;  %s28_s20 = int_to_ptr.vmem [resolvable:$true] %s27_s20 }
   0x7   :  { %s294_s22 = smov 1   ;;  %s38_s25 = sshll.u32 %s352_s2, 4  ;;  %s39_s25 = int_to_ptr.hbm [resolvable:$true] %s38_s25 }
   0x8   :  { %33 = dma.hbm_to_vmem [thread:$0]  %s26_s17, 96, %s28_s20, [#allocation3], %s293_s21, %s293_s21, %s294_s22  }
   0x9   :  { %s295_s0 = smov [#allocation7]  }
   0xa   :  { %s40_s26 = sshll.u32 %s295_s0, 4  ;;  %s41_s26 = int_to_ptr.vmem [resolvable:$true] %s40_s26 }
   0xb   :  { %46 = dma.hbm_to_vmem [thread:$0]  %s39_s25, 96, %s41_s26, [#allocation8], %s293_s21, %s293_s21, %s294_s22  }
   0xc   :  { %283 = dma.done.wait [#allocation5], 16  }
   0xd   :  { %284 = vsyncadd [#allocation5], 4294967280 }
   0xe   :  { %285 = dma.done.wait [#allocation3], 96  }
   0xf   :  { %286 = vsyncadd [#allocation3], 4294967200 }
  0x10   :  { %287 = dma.done.wait [#allocation8], 96  }
  0x11   :  { %288 = vsyncadd [#allocation8], 4294967200 }
  0x12   :  { %59 = sfence }
  0x13   :  { %v69_v0 = vld [vmem:[#allocation7] sm:$0x1]  ;;  %v71_v1 = vld [vmem:[#allocation7 + $0x1] sm:$0x1]  ;;  %v73_v2 = vld [vmem:[#allocation7 + $0x2] sm:$0x1] }
  0x14   :  { %v75_v3 = vld [vmem:[#allocation7 + $0x3] sm:$0x1]  ;;  %v77_v4 = vld [vmem:[#allocation7 + $0x4] sm:$0x1]  ;;  %v79_v5 = vld [vmem:[#allocation7 + $0x5] sm:$0x1]  ;;  %v80_v6 = vsub.f32 %v69_v0, %v73_v2 }
  0x15   :  { %v81_v7 = vsub.f32 %v71_v1, %v75_v3  ;;  %v98_v8 = vsub.f32 %v69_v0, %v77_v4  ;;  %v99_v9 = vsub.f32 %v71_v1, %v79_v5  ;;  %v117_v10 = vsub.f32 %v73_v2, %v77_v4  ;;  %s326_s1 = sld [smem:[#allocation2]]  ;;  %v136_v21 = vld [vmem:[#allocation6] sm:$0x1]  ;;  %v138_v22 = vld [vmem:[#allocation6 + $0x1] sm:$0x1]  ;;  %s296_s10 = smov [#allocation9]  }
  0x16   :  { %v118_v11 = vsub.f32 %v75_v3, %v79_v5  ;;  %v82_v12 = vmul.f32 %v80_v6, %v80_v6  ;;  %s328_s2 = sld [smem:[#allocation2 + $0x1]]  ;;  %v140_v23 = vld [vmem:[#allocation6 + $0x2] sm:$0x1]  ;;  %v142_v24 = vld [vmem:[#allocation6 + $0x3] sm:$0x1]  ;;  %v147_v25 = vmul.f32 %v136_v21, %v136_v21  ;;  %v148_v26 = vmul.f32 %v138_v22, %v138_v22  ;;  %s171_s11 = sshll.u32 %s296_s10, 4  ;;  %s172_s11 = int_to_ptr.vmem [resolvable:$true] %s171_s11 }
  0x17   :  { %v83_v13 = vmul.f32 %v81_v7, %v81_v7  ;;  %v100_v14 = vmul.f32 %v98_v8, %v98_v8  ;;  %v101_v15 = vmul.f32 %v99_v9, %v99_v9  ;;  %v119_v16 = vmul.f32 %v117_v10, %v117_v10  ;;  %s330_s27 = sld [smem:[#allocation2 + $0x2]]  ;;  %v144_v27 = vld [vmem:[#allocation6 + $0x4] sm:$0x1]  ;;  %v146_v28 = vld [vmem:[#allocation6 + $0x5] sm:$0x1]  ;;  %s173_s14 = sshll.u32 %s353_s3, 4  ;;  %s174_s14 = int_to_ptr.hbm [resolvable:$true] %s173_s14 }
  0x18   :  { %v120_v17 = vmul.f32 %v118_v11, %v118_v11  ;;  %v152_v29 = vmul.f32 %v140_v23, %v140_v23  ;;  %v153_v30 = vmul.f32 %v142_v24, %v142_v24  ;;  %v149_v36 = vadd.f32 %v148_v26, %v147_v25 }
  0x19   :  { %v84_v18 = vadd.f32 %v83_v13, %v82_v12  ;;  %v102_v19 = vadd.f32 %v101_v15, %v100_v14  ;;  %v158_v37 = vmul.f32 %v144_v27, %v144_v27  ;;  %v159_v38 = vmul.f32 %v146_v28, %v146_v28 }
  0x1a   :  { %v121_v20 = vadd.f32 %v120_v17, %v119_v16  ;;  %v154_v42 = vadd.f32 %v153_v30, %v152_v29 }
  0x1b   :  { %193 = vrsqrt.f32 %v84_v18  ;;  %s66_s28 = smul.f32 0.5, %s326_s1  ;;  %vm92_vm0 = vweird.f32 %v84_v18  ;;  %vm110_vm1 = vweird.f32 %v102_v19  ;;  %v160_v49 = vadd.f32 %v159_v38, %v158_v37 }
  0x1c   :  { %195 = vrsqrt.f32 %v102_v19  ;;  %s63_s29 = smul.f32 %s328_s2, %s326_s1  ;;  %vm129_vm3 = vweird.f32 %v121_v20 }
  0x1d   :  { %197 = vrsqrt.f32 %v121_v20  ;;  %s67_s30 = smul.f32 0.5, %s328_s2  ;;  %v150_v41 = vstv %s66_s28 }
  0x1e   :  { %s64_s4 = smul.f32 %s330_s27, %s326_s1  ;;  %s341_s7 = ssub.f32 0.0, %s63_s29  ;;  %v151_v48 = vmul.f32 %v150_v41, %v149_v36 }
  0x1f   :  { %s65_s5 = smul.f32 %s330_s27, %s328_s2  ;;  %v155_v44 = vstv %s67_s30 }
  0x20   :  { %s68_s6 = smul.f32 0.5, %s330_s27  ;;  %s103_s8 = ssub.f32 0.0, %s64_s4  ;;  %v156_v52 = vmul.f32 %v155_v44, %v154_v42  ;;  %v96_v56 = vstv %s341_s7 }
  0x21   :  { %v194_v31 = vpop.eup %193  ;;  %s122_s9 = ssub.f32 0.0, %s65_s5 }
  0x22   :  { %v196_v32 = vpop.eup %195  ;;  %v87_v33 = vmul.f32 %v194_v31, %v84_v18  ;;  %vm93_vm2 = vweird.f32 %v194_v31  ;;  %v161_v54 = vstv %s68_s6  ;;  %v114_v59 = vstv %s103_s8 }
  0x23   :  { %v198_v34 = vpop.eup %197  ;;  %v105_v35 = vmul.f32 %v196_v32, %v102_v19  ;;  %vm111_vm4 = vweird.f32 %v196_v32  ;;  %vm94_vm6 = vmor %vm92_vm0, %vm93_vm2  ;;  %v133_v60 = vstv %s122_s9  ;;  %v157_v63 = vadd.f32 %v156_v52, %v151_v48 }
  0x24   :  { %v88_v39 = vmul.f32 %v194_v31, %v87_v33  ;;  %v124_v40 = vmul.f32 %v198_v34, %v121_v20  ;;  %vm130_vm5 = vweird.f32 %v198_v34  ;;  %vm112_vm7 = vmor %vm110_vm1, %vm111_vm4  ;;  %v162_v0 = vmul.f32 %v161_v54, %v160_v49 }
  0x25   :  { %v106_v43 = vmul.f32 %v196_v32, %v105_v35  ;;  %vm131_vm8 = vmor %vm129_vm3, %vm130_vm5 }
  0x26   :  { %v89_v45 = vmul.f32 0.5, %v88_v39  ;;  %v125_v46 = vmul.f32 %v198_v34, %v124_v40  ;;  %v163_v7 = vadd.f32 %v162_v0, %v157_v63 }
  0x27   :  { %v107_v47 = vmul.f32 0.5, %v106_v43 }
  0x28   :  { %v90_v50 = vsub.f32 1.5, %v89_v45  ;;  %v126_v51 = vmul.f32 0.5, %v125_v46 }
  0x29   :  { %v108_v53 = vsub.f32 1.5, %v107_v47 }
  0x2a   :  { %v91_v55 = vmul.f32 %v194_v31, %v90_v50  ;;  %v127_v57 = vsub.f32 1.5, %v126_v51 }
  0x2b   :  { %v109_v58 = vmul.f32 %v196_v32, %v108_v53 }
  0x2c   :  { %v95_v61 = vsel %vm94_vm6, %v194_v31, %v91_v55  ;;  %v128_v62 = vmul.f32 %v198_v34, %v127_v57 }
  0x2d   :  { %v97_v1 = vmul.f32 %v96_v56, %v95_v61  ;;  %v113_v2 = vsel %vm112_vm7, %v196_v32, %v109_v58 }
  0x2e   :  { %v115_v3 = vmul.f32 %v114_v59, %v113_v2  ;;  %v132_v4 = vsel %vm131_vm8, %v198_v34, %v128_v62 }
  0x2f   :  { %v134_v5 = vmul.f32 %v133_v60, %v132_v4 }
  0x30   :  { %v116_v6 = vadd.f32 %v115_v3, %v97_v1 }
  0x32   :  { %v135_v8 = vadd.f32 %v134_v5, %v116_v6 }
  0x34   :  { %v164_v9 = vadd.f32 %v163_v7, %v135_v8 }
  0x36   :  { %165 = vst [vmem:[#allocation9] sm:$0x1] %v164_v9 }
  0x37   :  { %176 = dma.vmem_to_hbm [thread:$0]  %s172_s11, 16, %s174_s14, [#allocation4]  }
  0x38   :  { %289 = dma.done.wait [#allocation4], 16  }
  0x39   :  { %290 = vsyncadd [#allocation4], 4294967280 }
  0x3a   :  { %181 = vsyncpa [#allocation3], 1 }
  0x3b   :  { %182 = vsyncpa [#allocation8], 1 }
  0x3c   :  { %183 = vsyncpa [#allocation4], 1 }
  0x3d   :  { %184 = vsyncpa [#allocation5], 1 }

</bundles_post_ra>
